<compile_context>
chip_gen: v7x
topology: tpu7x:2x2x1
jax: 0.10.0
libtpu: 0.0.40
codegen_flags: <defaults>
</compile_context>

<pallas_src>
import functools

import jax
import jax.numpy as jnp
from jax.experimental import pallas as pl
from jax.experimental.pallas import tpu as pltpu


def _cnn_classifier_kernel(p_ref, q_ref, wconv_ref, bconv_ref, wlin_ref, blin_ref,
                           out_ref, *, window_size, pool_k, flatten):
    """One batch tile of CNN_Classifier.forward.

    p_ref:     (TB, doc_len,   E)   activation chunk
    q_ref:     (TB, query_len, E)   activation chunk
    wconv_ref: (W, E, C_pad)        bf16 conv weight, channels zero-padded to 128
    bconv_ref: (1, C_pad)           f32 conv bias   (zero-padded)
    wlin_ref:  (1, C_pad)           f32 linear weight (zero-padded)
    blin_ref:  (1, 1)               f32 linear bias
    out_ref:   (1, TB)              f32 sigmoid scores, lane-dense along batch
    """
    W = window_size
    # Concat the two sequence chunks once, in VMEM (no HBM round-trip for the
    # concatenated slab), cast to bf16 for the MXU; accumulation stays f32.
    x = jnp.concatenate([p_ref[...], q_ref[...]], axis=1).astype(jnp.bfloat16)
    TB, L, E = x.shape
    c_pad = wconv_ref.shape[-1]
    wconv = wconv_ref[...]                                   # (W, E, C_pad) bf16

    # Only the first pool_k conv rows feed the max-pool, so only the first
    # rows = pool_k + W - 1 (== emb_len) input rows are needed.
    rows = pool_k + W - 1

    if flatten:
        # Fast path (E % 16 == 0): flatten (TB, rows, E) -> (TB*rows, E)
        # (layout-trivial: rows % 16 == 0 so batch blocks occupy whole bf16
        # sublane tiles) and run W accumulated 2-D matmuls.
        xu = x[:, :rows, :] if L > rows else x               # (TB, rows, E)
        x2 = xu.reshape(TB * rows, E)
        dn = (((1,), (0,)), ((), ()))
        acc = jax.lax.dot_general(x2, wconv[0], dn,
                                  preferred_element_type=jnp.float32)
        if W > 1:
            # Zero-pad W-1 rows once so every window offset is a plain slice.
            # Rows that read the pad (or a neighboring batch) only land in conv
            # rows h >= pool_k, which the pool never reads.
            x2p = jnp.concatenate([x2, jnp.zeros((W - 1, E), jnp.bfloat16)],
                                  axis=0)
            for w in range(1, W):                            # static, unrolled
                acc = acc + jax.lax.dot_general(
                    x2p[w:w + TB * rows, :], wconv[w], dn,
                    preferred_element_type=jnp.float32)
        conv = acc.reshape(TB, rows, c_pad)                  # (TB, rows, C_pad) f32
    else:
        # Fallback (emb_len not 16-aligned): rank-3 contraction over E,
        # restricted to the pool_k rows the pool consumes.
        dn = (((2,), (0,)), ((), ()))
        conv = jax.lax.dot_general(x[:, 0:pool_k, :], wconv[0], dn,
                                   preferred_element_type=jnp.float32)
        for w in range(1, W):                                # static, unrolled
            conv = conv + jax.lax.dot_general(
                x[:, w:w + pool_k, :], wconv[w], dn,
                preferred_element_type=jnp.float32)

    # MaxPool2d(kernel=[pool_k, 1]); conv bias added after the max (exact
    # identity), saving a (TB, rows, C_pad) add slab.
    pooled = jnp.max(conv[:, :pool_k, :], axis=1) + bconv_ref[...]   # (TB, C_pad)

    # Dropout(p=0.0) is the identity (eval mode).

    # Linear(C, 1): VPU multiply + lane reduce (padded channels carry zero weight).
    fc = jnp.sum(pooled * wlin_ref[...], axis=-1, keepdims=True) + blin_ref[...]
    scores = jax.nn.sigmoid(fc)                              # (TB, 1) f32

    # Lane-dense batch output: move the (TB, 1) column into a (1, TB) row via a
    # diagonal select + sublane reduce (no transpose / layout-hostile reshape).
    r = jax.lax.broadcasted_iota(jnp.int32, (TB, TB), 0)
    c = jax.lax.broadcasted_iota(jnp.int32, (TB, TB), 1)
    row = jnp.sum(jnp.where(r == c, jnp.broadcast_to(scores, (TB, TB)), 0.0),
                  axis=0, keepdims=True)                     # (1, TB)
    out_ref[...] = row.astype(out_ref.dtype)


def prepare_params(params, *, window_size, emb_len, lane=128):
    """PyTorch-layout params -> kernel layout (channels zero-padded to 128)."""
    wconv, bconv, wlin, blin = params          # (C,1,W,E), (C,), (1,C), (1,)
    C = wconv.shape[0]
    assert wconv.shape[1] == 1, "module hard-codes in_channels == 1"
    c_pad = ((C + lane - 1) // lane) * lane
    # (C, 1, W, E) -> (W, E, C), zero-pad channels, bf16 for the MXU operand.
    wconv_k = jnp.transpose(wconv.reshape(C, window_size, emb_len), (1, 2, 0))
    wconv_k = jnp.pad(wconv_k, ((0, 0), (0, 0), (0, c_pad - C))).astype(jnp.bfloat16)
    bconv_k = jnp.pad(bconv.astype(jnp.float32), (0, c_pad - C)).reshape(1, c_pad)
    wlin_k = jnp.pad(wlin.astype(jnp.float32), ((0, 0), (0, c_pad - C)))
    blin_k = blin.astype(jnp.float32).reshape(1, 1)
    return wconv_k, bconv_k, wlin_k, blin_k


def cnn_classifier_forward(p_prime, q_prime, kparams, *, window_size, batch_tile=None):
    """JAX wrapper: grid sizing + pallas_call.  Mirrors CNN_Classifier.forward."""
    B, doc_len, E = p_prime.shape
    _, query_len, _ = q_prime.shape
    L = doc_len + query_len
    H = L - window_size + 1                 # conv output height
    pool_k = E - window_size + 1            # MaxPool2d kernel height
    assert 1 <= pool_k <= H, "MaxPool2d kernel taller than conv output"
    # The PyTorch module only type-checks when the pooled height squeezes away.
    assert (H - pool_k) // pool_k + 1 == 1, \
        "choose shapes with doc_len + query_len close to emb_len"

    wconv_k, bconv_k, wlin_k, blin_k = kparams
    c_pad = wconv_k.shape[-1]
    # Fast (flattened 2-D matmul) path needs the (TB*E, E) reshape to be
    # layout-trivial: E a multiple of the bf16 sublane tile (16).
    flatten = (E % 16 == 0)

    # Grid-step sizing: a single step for small batches (sub-us steps are pure
    # pipeline overhead on v5e/v6e's single TC, and not worth megacore-sharding
    # on v7x).  For large batches, tile with TB a multiple of 128 so the
    # lane-dense output block stays unmasked; on v7x an even number of steps
    # keeps both TensorCores equally loaded.  Per-step VMEM at TB=256, E=16 is
    # ~2 MB — far under the scoped default on all generations.
    if batch_tile is None:
        batch_tile = B if B <= 512 else 256
    if batch_tile >= B:
        TB, b_pad = B, B
    else:
        TB = max(128, (batch_tile // 128) * 128)
        b_pad = ((B + TB - 1) // TB) * TB
    if b_pad != B:
        pad = ((0, b_pad - B), (0, 0), (0, 0))
        p_prime = jnp.pad(p_prime, pad)
        q_prime = jnp.pad(q_prime, pad)
    grid = (b_pad // TB,)

    # Note: upstream may feed p/q as bf16 to halve the dominant HBM read
    # stream; the kernel casts to bf16 before the MXU either way.
    out = pl.pallas_call(
        functools.partial(_cnn_classifier_kernel, window_size=window_size,
                          pool_k=pool_k, flatten=flatten),
        out_shape=jax.ShapeDtypeStruct((1, b_pad), jnp.float32),
        grid=grid,
        in_specs=[
            pl.BlockSpec((TB, doc_len, E), lambda i: (i, 0, 0)),
            pl.BlockSpec((TB, query_len, E), lambda i: (i, 0, 0)),
            pl.BlockSpec((window_size, E, c_pad), lambda i: (0, 0, 0)),
            pl.BlockSpec((1, c_pad), lambda i: (0, 0)),
            pl.BlockSpec((1, c_pad), lambda i: (0, 0)),
            pl.BlockSpec((1, 1), lambda i: (0, 0)),
        ],
        out_specs=pl.BlockSpec((1, TB), lambda i: (0, i)),
        compiler_params=pltpu.CompilerParams(
            dimension_semantics=("parallel",)),
    )(p_prime, q_prime, wconv_k, bconv_k, wlin_k, blin_k)

    return out[0, :B].reshape(B, 1)          # (B, 1) — matches PyTorch output


def init_params(key, in_channels, out_channels, window_size, emb_len):
    """Deterministic init matching the PyTorch layer shapes (uniform bounds)."""
    k1, k2, k3, k4 = jax.random.split(key, 4)
    fan_in_conv = in_channels * window_size * emb_len
    bound_c = 1.0 / jnp.sqrt(fan_in_conv)
    wconv = jax.random.uniform(k1, (out_channels, in_channels, window_size, emb_len),
                               jnp.float32, -bound_c, bound_c)
    bconv = jax.random.uniform(k2, (out_channels,), jnp.float32, -bound_c, bound_c)
    bound_l = 1.0 / jnp.sqrt(out_channels)
    wlin = jax.random.uniform(k3, (1, out_channels), jnp.float32, -bound_l, bound_l)
    blin = jax.random.uniform(k4, (1,), jnp.float32, -bound_l, bound_l)
    return wconv, bconv, wlin, blin


def _reference_forward(p_prime, q_prime, params, *, window_size):
    """Pure-JAX f32 reference mirroring the PyTorch module."""
    wconv, bconv, wlin, blin = params
    x = jnp.concatenate([p_prime, q_prime], axis=1)          # (B, L, E)
    _, L, E = x.shape
    C = wconv.shape[0]
    W = window_size
    H = L - W + 1
    patches = jnp.stack([x[:, w:w + H, :] for w in range(W)], axis=2)   # (B,H,W,E)
    conv = jnp.einsum('bhwe,cwe->bhc', patches, wconv.reshape(C, W, E)) + bconv
    pool_k = E - W + 1
    pooled = jnp.max(conv[:, :pool_k, :], axis=1)            # (B, C)
    return jax.nn.sigmoid(pooled @ wlin.T + blin)            # (B, 1)


if __name__ == "__main__":
    # Small shapes consistent with the module: emb_len == doc_len + query_len
    # so the MaxPool output squeezes to (B, out_channels).
    B = 16
    doc_len = 8
    query_len = 8
    emb_len = 16
    window_size = 3
    in_channels = 1
    out_channels = 4

    key = jax.random.PRNGKey(0)
    kp, kq, kw = jax.random.split(key, 3)
    p_prime = jax.random.normal(kp, (B, doc_len, emb_len), jnp.float32)
    q_prime = jax.random.normal(kq, (B, query_len, emb_len), jnp.float32)
    params = init_params(kw, in_channels, out_channels, window_size, emb_len)
    kparams = prepare_params(params, window_size=window_size, emb_len=emb_len)

    pred_scores = cnn_classifier_forward(p_prime, q_prime, kparams,
                                         window_size=window_size)
    pred_scores = jax.block_until_ready(pred_scores)
    assert pred_scores.shape == (B, 1)
    assert bool(jnp.all((pred_scores >= 0.0) & (pred_scores <= 1.0)))

    # bf16 MXU operands with f32 accumulation over K = W*E = 48: error should
    # be well under 1e-2 on sigmoid outputs.
    ref = _reference_forward(p_prime, q_prime, params, window_size=window_size)
    max_err = float(jnp.max(jnp.abs(pred_scores - ref)))
    assert max_err < 1e-2, f"mismatch vs f32 reference: {max_err}"
    print("KERNEL_OK")
</pallas_src>

<mosaic_0001>
module attributes {stable_mosaic.version = 11 : i64} {
  func.func @_cnn_classifier_kernel(%arg0: i32, %arg1: memref<16x8x16xf32, #tpu.memory_space<vmem>>, %arg2: memref<16x8x16xf32, #tpu.memory_space<vmem>>, %arg3: memref<3x16x128xbf16, #tpu.memory_space<vmem>>, %arg4: memref<1x128xf32, #tpu.memory_space<vmem>>, %arg5: memref<1x128xf32, #tpu.memory_space<vmem>>, %arg6: memref<1x1xf32, #tpu.memory_space<vmem>>, %arg7: memref<1x16xf32, #tpu.memory_space<vmem>>) attributes {dimension_semantics = [#tpu.dimension_semantics<parallel>], iteration_bounds = array<i64: 1>, scalar_prefetch = 0 : i64, scratch_operands = 0 : i64, tpu.core_type = #tpu.core_type<tc>, window_params = [{transform_indices = @transform_0, window_bounds = array<i64: 16, 8, 16>}, {transform_indices = @transform_1, window_bounds = array<i64: 16, 8, 16>}, {pipeline_mode = #tpu.pipeline_mode<synchronous>, transform_indices = @transform_2, window_bounds = array<i64: 3, 16, 128>}, {pipeline_mode = #tpu.pipeline_mode<synchronous>, transform_indices = @transform_3, window_bounds = array<i64: 1, 128>}, {pipeline_mode = #tpu.pipeline_mode<synchronous>, transform_indices = @transform_4, window_bounds = array<i64: 1, 128>}, {pipeline_mode = #tpu.pipeline_mode<synchronous>, transform_indices = @transform_5, window_bounds = array<i64: 1, 1>}, {transform_indices = @transform_6, window_bounds = array<i64: 1, 16>}]} {
    %c0 = arith.constant 0 : index
    %c0_0 = arith.constant 0 : index
    %c0_1 = arith.constant 0 : index
    %0 = vector.load %arg1[%c0, %c0_0, %c0_1] : memref<16x8x16xf32, #tpu.memory_space<vmem>>, vector<16x8x16xf32>
    %c0_2 = arith.constant 0 : index
    %c0_3 = arith.constant 0 : index
    %c0_4 = arith.constant 0 : index
    %1 = vector.load %arg2[%c0_2, %c0_3, %c0_4] : memref<16x8x16xf32, #tpu.memory_space<vmem>>, vector<16x8x16xf32>
    %2 = tpu.concatenate %0, %1 in 1 : vector<16x8x16xf32>, vector<16x8x16xf32> -> vector<16x16x16xf32>
    %3 = arith.truncf %2 : vector<16x16x16xf32> to vector<16x16x16xbf16>
    %c0_5 = arith.constant 0 : index
    %c0_6 = arith.constant 0 : index
    %c0_7 = arith.constant 0 : index
    %4 = vector.load %arg3[%c0_5, %c0_6, %c0_7] : memref<3x16x128xbf16, #tpu.memory_space<vmem>>, vector<3x16x128xbf16>
    %5 = vector.shape_cast %3 : vector<16x16x16xbf16> to vector<256x16xbf16>
    %6 = vector.extract_strided_slice %4 {offsets = [0, 0, 0], sizes = [1, 16, 128], strides = [1, 1, 1]} : vector<3x16x128xbf16> to vector<1x16x128xbf16>
    %7 = vector.shape_cast %6 : vector<1x16x128xbf16> to vector<16x128xbf16>
    %cst = arith.constant dense<0.000000e+00> : vector<256x128xf32>
    %8 = tpu.matmul %5, %7, %cst {dimension_numbers = #tpu.dot_dimension_numbers<[1], [0], [0], [1], [0, 0, 1, 1], [], []>} : vector<256x16xbf16>, vector<16x128xbf16>, vector<256x128xf32> -> vector<256x128xf32>
    %cst_8 = arith.constant 0.000000e+00 : bf16
    %9 = vector.broadcast %cst_8 : bf16 to vector<2x16xbf16>
    %10 = tpu.concatenate %5, %9 in 0 : vector<256x16xbf16>, vector<2x16xbf16> -> vector<258x16xbf16>
    %11 = vector.extract_strided_slice %10 {offsets = [1, 0], sizes = [256, 16], strides = [1, 1]} : vector<258x16xbf16> to vector<256x16xbf16>
    %12 = vector.extract_strided_slice %4 {offsets = [1, 0, 0], sizes = [1, 16, 128], strides = [1, 1, 1]} : vector<3x16x128xbf16> to vector<1x16x128xbf16>
    %13 = vector.shape_cast %12 : vector<1x16x128xbf16> to vector<16x128xbf16>
    %cst_9 = arith.constant dense<0.000000e+00> : vector<256x128xf32>
    %14 = tpu.matmul %11, %13, %cst_9 {dimension_numbers = #tpu.dot_dimension_numbers<[1], [0], [0], [1], [0, 0, 1, 1], [], []>} : vector<256x16xbf16>, vector<16x128xbf16>, vector<256x128xf32> -> vector<256x128xf32>
    %15 = arith.addf %8, %14 : vector<256x128xf32>
    %16 = vector.extract_strided_slice %10 {offsets = [2, 0], sizes = [256, 16], strides = [1, 1]} : vector<258x16xbf16> to vector<256x16xbf16>
    %17 = vector.extract_strided_slice %4 {offsets = [2, 0, 0], sizes = [1, 16, 128], strides = [1, 1, 1]} : vector<3x16x128xbf16> to vector<1x16x128xbf16>
    %18 = vector.shape_cast %17 : vector<1x16x128xbf16> to vector<16x128xbf16>
    %cst_10 = arith.constant dense<0.000000e+00> : vector<256x128xf32>
    %19 = tpu.matmul %16, %18, %cst_10 {dimension_numbers = #tpu.dot_dimension_numbers<[1], [0], [0], [1], [0, 0, 1, 1], [], []>} : vector<256x16xbf16>, vector<16x128xbf16>, vector<256x128xf32> -> vector<256x128xf32>
    %20 = arith.addf %15, %19 : vector<256x128xf32>
    %21 = vector.shape_cast %20 : vector<256x128xf32> to vector<16x16x128xf32>
    %22 = vector.extract_strided_slice %21 {offsets = [0, 0, 0], sizes = [16, 14, 128], strides = [1, 1, 1]} : vector<16x16x128xf32> to vector<16x14x128xf32>
    %cst_11 = arith.constant dense<0xFF800000> : vector<16x128xf32>
    %23 = vector.multi_reduction <maximumf>, %22, %cst_11 [1] : vector<16x14x128xf32> to vector<16x128xf32>
    %c0_12 = arith.constant 0 : index
    %c0_13 = arith.constant 0 : index
    %24 = vector.load %arg4[%c0_12, %c0_13] : memref<1x128xf32, #tpu.memory_space<vmem>>, vector<1x128xf32>
    %25 = vector.broadcast %24 : vector<1x128xf32> to vector<16x128xf32>
    %26 = arith.addf %23, %25 : vector<16x128xf32>
    %c0_14 = arith.constant 0 : index
    %c0_15 = arith.constant 0 : index
    %27 = vector.load %arg5[%c0_14, %c0_15] : memref<1x128xf32, #tpu.memory_space<vmem>>, vector<1x128xf32>
    %28 = vector.broadcast %27 : vector<1x128xf32> to vector<16x128xf32>
    %29 = arith.mulf %26, %28 : vector<16x128xf32>
    %cst_16 = arith.constant dense<0.000000e+00> : vector<16xf32>
    %30 = vector.multi_reduction <add>, %29, %cst_16 [1] : vector<16x128xf32> to vector<16xf32>
    %31 = vector.shape_cast %30 : vector<16xf32> to vector<16x1xf32>
    %c0_17 = arith.constant 0 : index
    %c0_18 = arith.constant 0 : index
    %32 = vector.load %arg6[%c0_17, %c0_18] : memref<1x1xf32, #tpu.memory_space<vmem>>, vector<1x1xf32>
    %33 = vector.broadcast %32 : vector<1x1xf32> to vector<16x1xf32>
    %34 = arith.addf %31, %33 : vector<16x1xf32>
    %35 = arith.negf %34 : vector<16x1xf32>
    %36 = math.exp %35 : vector<16x1xf32>
    %cst_19 = arith.constant 1.000000e+00 : f32
    %37 = vector.broadcast %cst_19 : f32 to vector<16x1xf32>
    %38 = arith.addf %37, %36 : vector<16x1xf32>
    %39 = arith.divf %37, %38 : vector<16x1xf32>
    %40 = tpu.iota {dimensions = array<i32: 0>} : vector<16x16xi32>
    %41 = tpu.iota {dimensions = array<i32: 1>} : vector<16x16xi32>
    %42 = arith.cmpi eq, %40, %41 : vector<16x16xi32>
    %43 = vector.shape_cast %39 : vector<16x1xf32> to vector<16x1xf32>
    %44 = vector.broadcast %43 : vector<16x1xf32> to vector<16x16xf32>
    %cst_20 = arith.constant 0.000000e+00 : f32
    %45 = vector.broadcast %cst_20 : f32 to vector<16x16xf32>
    %46 = arith.select %42, %44, %45 : vector<16x16xi1>, vector<16x16xf32>
    %cst_21 = arith.constant dense<0.000000e+00> : vector<16xf32>
    %47 = vector.multi_reduction <add>, %46, %cst_21 [0] : vector<16x16xf32> to vector<16xf32>
    %48 = vector.shape_cast %47 : vector<16xf32> to vector<1x16xf32>
    %c0_22 = arith.constant 0 : index
    %c0_23 = arith.constant 0 : index
    %49 = vector.load %arg7[%c0_22, %c0_23] : memref<1x16xf32, #tpu.memory_space<vmem>>, vector<1x16xf32>
    tpu.vector_store %arg7[%c0_22, %c0_23], %48 {strides = array<i32>} : memref<1x16xf32, #tpu.memory_space<vmem>>, vector<1x16xf32>,
    return
  }
  func.func @transform_0(%arg0: i32) -> (i32, i32, i32) {
    %c0_i32 = arith.constant 0 : i32
    %c0_i32_0 = arith.constant 0 : i32
    %c0_i32_1 = arith.constant 0 : i32
    return %arg0, %c0_i32, %c0_i32_0 : i32, i32, i32
  }
  func.func @transform_1(%arg0: i32) -> (i32, i32, i32) {
    %c0_i32 = arith.constant 0 : i32
    %c0_i32_0 = arith.constant 0 : i32
    %c0_i32_1 = arith.constant 0 : i32
    return %arg0, %c0_i32, %c0_i32_0 : i32, i32, i32
  }
  func.func @transform_2(%arg0: i32) -> (i32, i32, i32) {
    %c0_i32 = arith.constant 0 : i32
    %c0_i32_0 = arith.constant 0 : i32
    %c0_i32_1 = arith.constant 0 : i32
    %c0_i32_2 = arith.constant 0 : i32
    return %c0_i32, %c0_i32_0, %c0_i32_1 : i32, i32, i32
  }
  func.func @transform_3(%arg0: i32) -> (i32, i32) {
    %c0_i32 = arith.constant 0 : i32
    %c0_i32_0 = arith.constant 0 : i32
    %c0_i32_1 = arith.constant 0 : i32
    return %c0_i32, %c0_i32_0 : i32, i32
  }
  func.func @transform_4(%arg0: i32) -> (i32, i32) {
    %c0_i32 = arith.constant 0 : i32
    %c0_i32_0 = arith.constant 0 : i32
    %c0_i32_1 = arith.constant 0 : i32
    return %c0_i32, %c0_i32_0 : i32, i32
  }
  func.func @transform_5(%arg0: i32) -> (i32, i32) {
    %c0_i32 = arith.constant 0 : i32
    %c0_i32_0 = arith.constant 0 : i32
    %c0_i32_1 = arith.constant 0 : i32
    return %c0_i32, %c0_i32_0 : i32, i32
  }
  func.func @transform_6(%arg0: i32) -> (i32, i32) {
    %c0_i32 = arith.constant 0 : i32
    %c0_i32_0 = arith.constant 0 : i32
    return %c0_i32, %arg0 : i32, i32
  }
}

</mosaic_0001>

<bundles_post_ra>
// kernel: tpu_custom_call.1
= control target key start
LH: loop header
LB: loop body
LE: loop exit
PB: predicated region body
PF: predicated region fallthrough
CT: control target
= control target key end

     0   :  { %s2019_s0 = inlined_call_operand.hbm [shape: f32[16,8,16], index: 0, kind: input, shape index: {}]   ;;  %s2020_s1 = inlined_call_operand.hbm [shape: f32[16,8,16], index: 1, kind: input, shape index: {}]   ;;  %s2021_s2 = inlined_call_operand.hbm [shape: bf16[3,16,128], index: 2, kind: input, shape index: {}]   ;;  %s2022_s3 = inlined_call_operand.vmem [shape: f32[1,128], index: 3, kind: input, shape index: {}]   ;;  %s2023_s4 = inlined_call_operand.vmem [shape: f32[1,128], index: 4, kind: input, shape index: {}]   ;;  %s2024_s5 = inlined_call_operand.<no memory space> [shape: f32[1,1], index: 5, kind: input, shape index: {}]   ;;  %s2025_s6 = inlined_call_operand.hbm [shape: f32[1,16], index: 6, kind: output, shape index: {}]  }
   0x1   :  { %v11_v0 = vstv %s2024_s5 }
   0x2   :  { %12 = vst [vmem:[#allocation2] sm:$0x1] %v11_v0 }
   0x3   :  { %13 = vsyncpa [#allocation4], 0 }
   0x4   :  { %14 = vsyncpa [#allocation7], 0 }
   0x5   :  { %15 = vsyncpa [#allocation5], 0  ;;  %s1658_s23 = smov [#allocation6]   ;;  %s1659_s25 = smov [#allocation3]  }
   0x6   :  { %s33_s24 = sshll.u32 %s1658_s23, 4  ;;  %s21_s26 = sshll.u32 %s1659_s25, 4  ;;  %s34_s24 = int_to_ptr.vmem [resolvable:$true] %s33_s24  ;;  %s1705_s26 = int_to_ptr.vmem [resolvable:$true] %s21_s26 }
   0x7   :  { %s1564_s29 = scalar_lea.hbm %s2020_s1, 2048 }
   0x8   :  { %p1565_p0 = scmp.ne.s32.totalorder %s2020_s1, %s1564_s29  ;;  %p1568_p1 = scmp.lt.u32.totalorder %s1564_s29, %s2020_s1 }
   0xa   :  { %p1570_p2 = pnand %p1568_p1, %p1565_p0 }
   0xc   :  { %1573 = shalt.err (!%p1570_p2)
}
   0xd   :  { %s1574_s9 = scalar_lea.vmem %s34_s24, 2048  ;;  %p1579_p4 = scmp.lt.s32.totalorder %s34_s24, %s34_s24 }
   0xe   :  { %p1575_p3 = scmp.ne.s32.totalorder %s34_s24, %s1574_s9  ;;  %p1580_p5 = scmp.lt.s32.totalorder %s1574_s9, %s1574_s9 }
  0x10   :  { %p1581_p6 = por %p1580_p5, %p1579_p4 }
  0x12   :  { %p1582_p7 = pnand %p1581_p6, %p1575_p3 }
  0x14   :  { %1585 = shalt.err (!%p1582_p7)
}
  0x15   :  { %s1660_s10 = smov 128   ;;  %s1661_s11 = smov 8  }
  0x16   :  { %39 = dma.hbm_to_vmem [thread:$0]  %s2020_s1, 2048, %s34_s24, [#allocation7], %s1660_s10, %s1660_s10, %s1661_s11  }
  0x17   :  { %s1586_s16 = scalar_lea.hbm %s2019_s0, 2048 }
  0x18   :  { %p1587_p8 = scmp.ne.s32.totalorder %s2019_s0, %s1586_s16  ;;  %p1590_p9 = scmp.lt.u32.totalorder %s1586_s16, %s2019_s0 }
  0x1a   :  { %p1592_p10 = pnand %p1590_p9, %p1587_p8 }
  0x1c   :  { %1595 = shalt.err (!%p1592_p10)
}
  0x1d   :  { %s1596_s21 = scalar_lea.vmem %s1705_s26, 2048  ;;  %p1601_p12 = scmp.lt.s32.totalorder %s1705_s26, %s1705_s26 }
  0x1e   :  { %p1597_p11 = scmp.ne.s32.totalorder %s1705_s26, %s1596_s21  ;;  %p1602_p13 = scmp.lt.s32.totalorder %s1596_s21, %s1596_s21 }
  0x20   :  { %p1603_p0 = por %p1602_p13, %p1601_p12 }
  0x22   :  { %p1604_p1 = pnand %p1603_p0, %p1597_p11 }
  0x24   :  { %1607 = shalt.err (!%p1604_p1)
}
  0x25   :  { %27 = dma.hbm_to_vmem [thread:$0]  %s2019_s0, 2048, %s1705_s26, [#allocation4], %s1660_s10, %s1660_s10, %s1661_s11  }
  0x26   :  { %s1662_s23 = smov [#allocation8]   ;;  %s1608_s28 = scalar_lea.hbm %s2021_s2, 384 }
  0x27   :  { %s45_s24 = sshll.u32 %s1662_s23, 4  ;;  %p1609_p2 = scmp.ne.s32.totalorder %s2021_s2, %s1608_s28  ;;  %s46_s24 = int_to_ptr.vmem [resolvable:$true] %s45_s24 }
  0x28   :  { %p1612_p3 = scmp.lt.u32.totalorder %s1608_s28, %s2021_s2 }
  0x2a   :  { %p1614_p4 = pnand %p1612_p3, %p1609_p2 }
  0x2c   :  { %1617 = shalt.err (!%p1614_p4)
}
  0x2d   :  { %s1618_s8 = scalar_lea.vmem %s46_s24, 384  ;;  %p1623_p6 = scmp.lt.s32.totalorder %s46_s24, %s46_s24 }
  0x2e   :  { %p1619_p5 = scmp.ne.s32.totalorder %s46_s24, %s1618_s8  ;;  %p1624_p7 = scmp.lt.s32.totalorder %s1618_s8, %s1618_s8 }
  0x30   :  { %p1625_p8 = por %p1624_p7, %p1623_p6 }
  0x32   :  { %p1626_p9 = pnand %p1625_p8, %p1619_p5 }
  0x34   :  { %1629 = shalt.err (!%p1626_p9)
}
  0x35   :  { %s1663_s0 = smov 64   ;;  %s1664_s26 = smov 4  }
  0x36   :  { %51 = dma.hbm_to_vmem [thread:$0]  %s2021_s2, 384, %s46_s24, [#allocation7], %s1663_s0, %s1663_s0, %s1664_s26  }
  0x37   :  { %1652 = dma.done.wait [#allocation4], 2048  }
  0x38   :  { %1653 = vsyncadd [#allocation4], 4294965248 }
  0x39   :  { %1654 = dma.done.wait [#allocation7], 2432  }
  0x3a   :  { %1655 = vsyncadd [#allocation7], 4294964864  ;;  %v1665_v1 = vmov 0   ;;  %v1553_v2 = vld [vmem:[#allocation8] sm:$0xff]   ;;  %v1554_v3 = vld [vmem:[#allocation8 + $0x8] sm:$0xff]   ;;  %vm261_vm0 = vcmask 130048  }
  0x3b   :  { %1551 = vset.pattern.permute.xlu1 %v1665_v1  ;;  %1552 = vset.pattern.permute.xlu0 %v1665_v1  ;;  %v68_v4 = vld [vmem:[#allocation3] sm:$0xff]  ;;  %v69_v6 = vld [vmem:[#allocation3 + $0x8] sm:$0xff]  ;;  %v1555_v10 = vld [vmem:[#allocation8 + $0x10] sm:$0xff]   ;;  %vm122_vm1 = vsmask.f32 7424  ;;  %vm687_vm2 = vcmask 1046528  }
  0x3c   :  { %1408 = vmatprep.subr.bf16.mxu0 %v1553_v2  ;;  %v84_v5 = vld [vmem:[#allocation6] sm:$0xff]  ;;  %1374 = vmatprep.subr.bf16.mxu1 %v1554_v3  ;;  %v85_v8 = vld [vmem:[#allocation6 + $0x8] sm:$0xff]  ;;  %v70_v11 = vld [vmem:[#allocation3 + $0x10] sm:$0xff]  ;;  %vm968_vm3 = vcmask 1045504   ;;  %vm1160_vm4 = vcmask 1041409   ;;  %vm1163_vm5 = vcmask 1042434  }
  0x3d   :  { %1409 = vmatpush3.bf16.msra.mxu0 %v1553_v2  ;;  %v1750_v7 = vpack.c.bf16 %v84_v5, %v68_v4  ;;  %1375 = vmatpush3.bf16.msra.mxu1 %v1554_v3  ;;  %v1752_v9 = vpack.c.bf16 %v85_v8, %v69_v6  ;;  %v86_v12 = vld [vmem:[#allocation6 + $0x10] sm:$0xff]  ;;  %v71_v16 = vld [vmem:[#allocation3 + $0x18] sm:$0xff]  ;;  %v72_v18 = vld [vmem:[#allocation3 + $0x20] sm:$0xff]  ;;  %vm1166_vm6 = vcmask 1043459   ;;  %vm1169_vm7 = vcmask 1044484  }
  0x3e   :  { %1476 = vmatprep.subr.bf16.mxu1 %v1553_v2  ;;  %v1758_v15 = vpack.c.bf16 %v86_v12, %v70_v11  ;;  %v87_v17 = vld [vmem:[#allocation6 + $0x18] sm:$0xff]  ;;  %1442 = vmatprep.subr.bf16.mxu0 %v1555_v10  ;;  %v88_v22 = vld [vmem:[#allocation6 + $0x20] sm:$0xff]  ;;  %v73_v23 = vld [vmem:[#allocation3 + $0x28] sm:$0xff]  ;;  %vm1172_vm8 = vcmask 1045509   ;;  %vm1175_vm9 = vcmask 1046534   ;;  %vm1178_vm10 = vcmask 1047559  }
  0x3f   :  { %1410 = vmatprep.mubr.msk.bf16.mxu0 %vm261_vm0, %v1750_v7  ;;  %v124_v13 = vshrl.u32 %v1750_v7, 16  ;;  %v126_v14 = vshll.u32 %v1750_v7, 16  ;;  %v131_v19 = vshll.u32 %v1752_v9, 16  ;;  %v135_v20 = vshrl.u32 %v1752_v9, 16  ;;  %v89_v24 = vld [vmem:[#allocation6 + $0x28] sm:$0xff]  ;;  %v74_v38 = vld [vmem:[#allocation3 + $0x30] sm:$0xff] }
  0x40   :  { %1411 = vmatmul.mubr.msk.bf16.vlgmr.msra.gmra.mrb[0].mxu0 %vm261_vm0, %v1752_v9  ;;  %v1764_v21 = vpack.c.bf16 %v87_v17, %v71_v16  ;;  %v139_v26 = vshll.u32 %v1758_v15, 16  ;;  %v143_v27 = vshrl.u32 %v1758_v15, 16  ;;  %v1770_v28 = vpack.c.bf16 %v88_v22, %v72_v18  ;;  %v90_v39 = vld [vmem:[#allocation6 + $0x30] sm:$0xff]  ;;  %v75_v45 = vld [vmem:[#allocation3 + $0x38] sm:$0xff]  ;;  %v76_v57 = vld [vmem:[#allocation3 + $0x40] sm:$0xff] }
  0x41   :  { %v128_v25 = vrot.slane %v126_v14, 1  ;;  %1443 = vmatpush3.bf16.msra.mxu0 %v1555_v10  ;;  %1414 = vmatprep.mubr.msk.bf16.mxu0 %vm261_vm0, %v1758_v15  ;;  %v133_v29 = vrot.slane %v131_v19, 1  ;;  %v1773_v31 = vpack.c.bf16 %v89_v24, %v73_v23  ;;  %v91_v46 = vld [vmem:[#allocation6 + $0x38] sm:$0xff]  ;;  %v1784_v49 = vpack.c.bf16 %v90_v39, %v74_v38  ;;  %v92_v58 = vld [vmem:[#allocation6 + $0x40] sm:$0xff]  ;;  %v77_v62 = vld [vmem:[#allocation3 + $0x48] sm:$0xff] }
  0x42   :  { %v147_v30 = vshll.u32 %v1764_v21, 16  ;;  %v141_v33 = vrot.slane %v139_v26, 1  ;;  %v155_v34 = vshll.u32 %v1770_v28, 16  ;;  %v151_v37 = vshrl.u32 %v1764_v21, 16  ;;  %v93_v63 = vld [vmem:[#allocation6 + $0x48] sm:$0xff]  ;;  %v78_v14 = vld [vmem:[#allocation3 + $0x50] sm:$0xff] }
  0x43   :  { %v129_v32 = vor.u32 %v128_v25, %v124_v13  ;;  %v137_v35 = vor.u32 %v135_v20, %v133_v29  ;;  %v159_v42 = vshrl.u32 %v1770_v28, 16  ;;  %v163_v43 = vshll.u32 %v1773_v31, 16  ;;  %v94_v16 = vld [vmem:[#allocation6 + $0x50] sm:$0xff]  ;;  %v95_v22 = vld [vmem:[#allocation6 + $0x58] sm:$0xff] }
  0x44   :  { %v149_v36 = vrot.slane %v147_v30, 1  ;;  %v145_v41 = vor.u32 %v143_v27, %v141_v33  ;;  %v157_v48 = vrot.slane %v155_v34, 1  ;;  %v1791_v53 = vpack.c.bf16 %v91_v46, %v75_v45 }
  0x45   :  { %v134_v40 = vsel %vm122_vm1, %v129_v32, %v133_v29  ;;  %v142_v44 = vsel %vm122_vm1, %v137_v35, %v141_v33  ;;  %v165_v52 = vrot.slane %v163_v43, 1  ;;  %v171_v54 = vshll.u32 %v1784_v49, 16  ;;  %v80_v35 = vld [vmem:[#allocation3 + $0x60] sm:$0xff] }
  0x46   :  { %1376 = vmatprep.mubr.msk.bf16.mxu1 %vm261_vm0, %v134_v40  ;;  %v150_v47 = vsel %vm122_vm1, %v145_v41, %v149_v36  ;;  %v153_v50 = vor.u32 %v151_v37, %v149_v36  ;;  %v161_v51 = vor.u32 %v159_v42, %v157_v48  ;;  %v167_v56 = vshrl.u32 %v1773_v31, 16  ;;  %v96_v36 = vld [vmem:[#allocation6 + $0x60] sm:$0xff]  ;;  %v81_v41 = vld [vmem:[#allocation3 + $0x68] sm:$0xff] }
  0x47   :  { %1377 = vmatmul.mubr.msk.bf16.vlgmr.msra.gmra.mrb[0].mxu1 %vm261_vm0, %v142_v44  ;;  %v175_v60 = vshrl.u32 %v1784_v49, 16  ;;  %v179_v61 = vshll.u32 %v1791_v53, 16  ;;  %v173_v0 = vrot.slane %v171_v54, 1  ;;  %v1807_v6 = vpack.c.bf16 %v93_v63, %v77_v62 }
  0x48   :  { %1477 = vmatpush3.bf16.msra.mxu1 %v1553_v2  ;;  %1415 = vmatmul.mubr.msk.bf16.gmra.mrb[4].mxu0 %vm261_vm0, %v1764_v21  ;;  %v158_v55 = vsel %vm122_vm1, %v153_v50, %v157_v48  ;;  %v166_v59 = vsel %vm122_vm1, %v161_v51, %v165_v52  ;;  %v1800_v2 = vpack.c.bf16 %v92_v58, %v76_v57  ;;  %v688_v8 = vrot.slane %v1750_v7, 1  ;;  %v79_v7 = vld [vmem:[#allocation3 + $0x58] sm:$0xff] }
  0x49   :  { %1380 = vmatprep.mubr.msk.bf16.mxu1 %vm261_vm0, %v150_v47  ;;  %1418 = vmatprep.mubr.msk.bf16.mxu0 %vm261_vm0, %v1770_v28  ;;  %v169_v3 = vor.u32 %v167_v56, %v165_v52  ;;  %v177_v4 = vor.u32 %v175_v60, %v173_v0  ;;  %v181_v5 = vrot.slane %v179_v61, 1  ;;  %v689_v10 = vrot.slane %v1752_v9, 1  ;;  %v98_v56 = vld [vmem:[#allocation6 + $0x70] sm:$0xff]  ;;  %v83_v61 = vld [vmem:[#allocation3 + $0x78] sm:$0xff] }
  0x4a   :  { %v187_v11 = vshll.u32 %v1800_v2, 16  ;;  %v183_v13 = vshrl.u32 %v1791_v53, 16  ;;  %v191_v18 = vshrl.u32 %v1800_v2, 16  ;;  %v195_v19 = vshll.u32 %v1807_v6, 16 }
  0x4b   :  { %v174_v12 = vsel %vm122_vm1, %v169_v3, %v173_v0  ;;  %v182_v17 = vsel %vm122_vm1, %v177_v4, %v181_v5  ;;  %v690_v20 = vsel %vm687_vm2, %v688_v8, %v689_v10  ;;  %v1819_v23 = vpack.c.bf16 %v94_v16, %v78_v14 }
  0x4c   :  { %v189_v9 = vrot.slane %v187_v11, 1  ;;  %v185_v24 = vor.u32 %v183_v13, %v181_v5  ;;  %v691_v25 = vrot.slane %v1758_v15, 1  ;;  %v197_v27 = vrot.slane %v195_v19, 1 }
  0x4d   :  { %v1826_v29 = vpack.c.bf16 %v95_v22, %v79_v7  ;;  %v693_v30 = vrot.slane %v1764_v21, 1  ;;  %v203_v32 = vshll.u32 %v1819_v23, 16  ;;  %v199_v34 = vshrl.u32 %v1807_v6, 16  ;;  %v97_v21 = vld [vmem:[#allocation6 + $0x68] sm:$0xff] }
  0x4e   :  { %v193_v26 = vor.u32 %v191_v18, %v189_v9  ;;  %v190_v33 = vsel %vm122_vm1, %v185_v24, %v189_v9  ;;  %v692_v37 = vsel %vm687_vm2, %v689_v10, %v691_v25  ;;  %v207_v15 = vshrl.u32 %v1819_v23, 16 }
  0x4f   :  { %1381 = vmatmul.mubr.msk.bf16.gmra.mrb[4].mxu1 %vm261_vm0, %v158_v55  ;;  %v211_v39 = vshll.u32 %v1826_v29, 16  ;;  %v694_v40 = vsel %vm687_vm2, %v691_v25, %v693_v30  ;;  %v205_v42 = vrot.slane %v203_v32, 1  ;;  %v1838_v43 = vpack.c.bf16 %v96_v36, %v80_v35  ;;  %v82_v55 = vld [vmem:[#allocation3 + $0x70] sm:$0xff] }
  0x50   :  { %1419 = vmatmul.mubr.msk.bf16.gmra.mrb[8].mxu0 %vm261_vm0, %v1773_v31  ;;  %1384 = vmatprep.mubr.msk.bf16.mxu1 %vm261_vm0, %v166_v59  ;;  %v198_v38 = vsel %vm122_vm1, %v193_v26, %v197_v27  ;;  %v201_v44 = vor.u32 %v199_v34, %v197_v27  ;;  %v695_v45 = vrot.slane %v1770_v28, 1  ;;  %v1844_v48 = vpack.c.bf16 %v97_v21, %v81_v41 }
  0x51   :  { %1422 = vmatprep.mubr.msk.bf16.mxu0 %vm261_vm0, %v1784_v49  ;;  %v209_v46 = vor.u32 %v207_v15, %v205_v42  ;;  %v213_v47 = vrot.slane %v211_v39, 1  ;;  %v697_v50 = vrot.slane %v1773_v31, 1  ;;  %v219_v51 = vshll.u32 %v1838_v43, 16  ;;  %v99_v31 = vld [vmem:[#allocation6 + $0x78] sm:$0xff] }
  0x52   :  { %v206_v52 = vsel %vm122_vm1, %v201_v44, %v205_v42  ;;  %v215_v54 = vshrl.u32 %v1826_v29, 16  ;;  %v696_v57 = vsel %vm687_vm2, %v693_v30, %v695_v45  ;;  %v223_v28 = vshrl.u32 %v1838_v43, 16 }
  0x53   :  { %v214_v58 = vsel %vm122_vm1, %v209_v46, %v213_v47  ;;  %v227_v59 = vshll.u32 %v1844_v48, 16  ;;  %v698_v60 = vsel %vm687_vm2, %v695_v45, %v697_v50  ;;  %v221_v62 = vrot.slane %v219_v51, 1 }
  0x54   :  { %v1856_v63 = vpack.c.bf16 %v98_v56, %v82_v55  ;;  %v217_v0 = vor.u32 %v215_v54, %v213_v47  ;;  %v699_v3 = vrot.slane %v1784_v49, 1  ;;  %v115_v8 = vpack.c.bf16 %v99_v31, %v83_v61 }
  0x55   :  { %v225_v4 = vor.u32 %v223_v28, %v221_v62  ;;  %v229_v5 = vrot.slane %v227_v59, 1  ;;  %v701_v10 = vrot.slane %v1791_v53, 1  ;;  %v231_v13 = vshrl.u32 %v1844_v48, 16 }
  0x56   :  { %v235_v11 = vshll.u32 %v1856_v63, 16  ;;  %v700_v14 = vsel %vm687_vm2, %v697_v50, %v699_v3  ;;  %v243_v18 = vshll.u32 %v115_v8, 16  ;;  %v705_v9 = vrot.slane %v1807_v6, 1 }
  0x57   :  { %1385 = vmatmul.mubr.msk.bf16.gmra.mrb[8].mxu1 %vm261_vm0, %v174_v12  ;;  %v222_v12 = vsel %vm122_vm1, %v217_v0, %v221_v62  ;;  %v230_v16 = vsel %vm122_vm1, %v225_v4, %v229_v5  ;;  %v702_v49 = vsel %vm687_vm2, %v699_v3, %v701_v10  ;;  %v247_v25 = vshrl.u32 %v115_v8, 16 }
  0x58   :  { %1423 = vmatmul.mubr.msk.bf16.gmra.mrb[12].mxu0 %vm261_vm0, %v1791_v53  ;;  %1388 = vmatprep.mubr.msk.bf16.mxu1 %vm261_vm0, %v182_v17  ;;  %v239_v17 = vshrl.u32 %v1856_v63, 16  ;;  %v237_v19 = vrot.slane %v235_v11, 1  ;;  %v233_v53 = vor.u32 %v231_v13, %v229_v5  ;;  %v245_v22 = vrot.slane %v243_v18, 1 }
  0x59   :  { %1444 = vmatprep.mubr.msk.bf16.mxu0 %vm261_vm0, %v690_v20  ;;  %v703_v20 = vrot.slane %v1800_v2, 1  ;;  %v707_v34 = vrot.slane %v1819_v23, 1  ;;  %v709_v35 = vrot.slane %v1826_v29, 1  ;;  %v713_v15 = vrot.slane %v1844_v48, 1 }
  0x5a   :  { %v241_v7 = vor.u32 %v239_v17, %v237_v19  ;;  %v238_v24 = vsel %vm122_vm1, %v233_v53, %v237_v19  ;;  %v249_v32 = vor.u32 %v247_v25, %v245_v22  ;;  %v717_v41 = vrot.slane %v115_v8, 1 }
  0x5b   :  { %v704_v26 = vsel %vm687_vm2, %v701_v10, %v703_v20  ;;  %v706_v30 = vsel %vm687_vm2, %v703_v20, %v705_v9  ;;  %vm1249_vm13 = vcmask 122880  }
  0x5c   :  { %v246_v27 = vsel %vm122_vm1, %v241_v7, %v245_v22 }
  0x5f   :  { %1389 = vmatmul.mubr.msk.bf16.gmra.mrb[12].mxu1 %vm261_vm0, %v190_v33  ;;  %v253_v33 = vrot.slane %v1665_v1, 1  ;;  %v711_v1 = vrot.slane %v1838_v43, 1 }
  0x60   :  { %1445 = vmatmul.mubr.msk.bf16.vlgmr.msra.gmra.mrb[0].mxu0 %vm261_vm0, %v692_v37  ;;  %1392 = vmatprep.mubr.msk.bf16.mxu1 %vm261_vm0, %v198_v38  ;;  %v708_v37 = vsel %vm687_vm2, %v705_v9, %v707_v34  ;;  %v710_v38 = vsel %vm687_vm2, %v707_v34, %v709_v35 }
  0x61   :  { %1448 = vmatprep.mubr.msk.bf16.mxu0 %vm261_vm0, %v694_v40  ;;  %v254_v36 = vsel %vm122_vm1, %v249_v32, %v253_v33  ;;  %v712_v39 = vsel %vm687_vm2, %v709_v35, %v711_v1  ;;  %v714_v40 = vsel %vm687_vm2, %v711_v1, %v713_v15  ;;  %v1936_v35 = vld [vmem:[%s2022_s3] ss:$0 sm:$0xff]  ;;  %s1666_s3 = smov [#allocation9]  }
  0x67   :  { %1393 = vmatmul.mubr.msk.bf16.gmra.mrb[16].mxu1 %vm261_vm0, %v206_v52 }
  0x68   :  { %1449 = vmatmul.mubr.msk.bf16.gmra.mrb[4].mxu0 %vm261_vm0, %v696_v57  ;;  %1396 = vmatprep.mubr.msk.bf16.mxu1 %vm261_vm0, %v214_v58 }
  0x69   :  { %1452 = vmatprep.mubr.msk.bf16.mxu0 %vm261_vm0, %v698_v60 }
  0x6f   :  { %1397 = vmatmul.mubr.msk.bf16.gmra.mrb[20].mxu1 %vm261_vm0, %v222_v12 }
  0x70   :  { %1453 = vmatmul.mubr.msk.bf16.gmra.mrb[8].mxu0 %vm261_vm0, %v700_v14  ;;  %1400 = vmatprep.mubr.msk.bf16.mxu1 %vm261_vm0, %v230_v16 }
  0x71   :  { %1456 = vmatprep.mubr.msk.bf16.mxu0 %vm261_vm0, %v702_v49 }
  0x77   :  { %1401 = vmatmul.mubr.msk.bf16.gmra.mrb[24].mxu1 %vm261_vm0, %v238_v24 }
  0x78   :  { %1457 = vmatmul.mubr.msk.bf16.gmra.mrb[12].mxu0 %vm261_vm0, %v704_v26  ;;  %1404 = vmatprep.mubr.msk.bf16.mxu1 %vm261_vm0, %v246_v27 }
  0x79   :  { %1460 = vmatprep.mubr.msk.bf16.mxu0 %vm261_vm0, %v706_v30 }
  0x7f   :  { %1405 = vmatmul.mubr.msk.bf16.gmra.mrb[28].mxu1 %vm261_vm0, %v254_v36 }
  0x80   :  { %1461 = vmatmul.mubr.msk.bf16.gmra.mrb[16].mxu0 %vm261_vm0, %v708_v37  ;;  %1426 = vmatprep.mubr.msk.bf16.mxu1 %vm261_vm0, %v1800_v2  ;;  %v715_v2 = vrot.slane %v1856_v63, 1 }
  0x81   :  { %1464 = vmatprep.mubr.msk.bf16.mxu0 %vm261_vm0, %v710_v38 }
  0x82   :  { %v716_v21 = vsel %vm687_vm2, %v713_v15, %v715_v2  ;;  %v718_v42 = vsel %vm687_vm2, %v715_v2, %v717_v41 }
  0x87   :  { %1427 = vmatmul.mubr.msk.bf16.vlgmr.msra.gmra.mrb[16].mxu1 %vm261_vm0, %v1807_v6  ;;  %v720_v6 = vsel %vm687_vm2, %v717_v41, %v253_v33  ;;  %v1941_v41 = vld [vmem:[%s2023_s4] ss:$0 sm:$0xff]  ;;  %s1257_s4 = sshll.u32 %s1666_s3, 4  ;;  %s1258_s4 = int_to_ptr.vmem [resolvable:$true] %s1257_s4 }
  0x88   :  { %1465 = vmatmul.mubr.msk.bf16.gmra.mrb[20].mxu0 %vm261_vm0, %v712_v39  ;;  %1430 = vmatprep.mubr.msk.bf16.mxu1 %vm261_vm0, %v1819_v23  ;;  %s1630_s14 = scalar_lea.vmem %s1258_s4, 16  ;;  %s1634_s15 = scalar_lea.vmem %s1258_s4, 32 }
  0x89   :  { %1468 = vmatprep.mubr.msk.bf16.mxu0 %vm261_vm0, %v714_v40  ;;  %p1631_p10 = scmp.ne.s32.totalorder %s1258_s4, %s1630_s14  ;;  %p1635_p11 = scmp.lt.s32.totalorder %s1258_s4, %s1258_s4 }
  0x8a   :  { %p1636_p12 = scmp.lt.s32.totalorder %s1634_s15, %s1630_s14 }
  0x8c   :  { %p1637_p13 = por %p1636_p12, %p1635_p11 }
  0x8e   :  { %p1638_p0 = pnand %p1637_p13, %p1631_p10 }
  0x8f   :  { %1431 = vmatmul.mubr.msk.bf16.gmra.mrb[20].mxu1 %vm261_vm0, %v1826_v29 }
  0x90   :  { %1469 = vmatmul.mubr.msk.bf16.gmra.mrb[24].mxu0 %vm261_vm0, %v716_v21  ;;  %1434 = vmatprep.mubr.msk.bf16.mxu1 %vm261_vm0, %v1838_v43 }
  0x91   :  { %1472 = vmatprep.mubr.msk.bf16.mxu0 %vm261_vm0, %v718_v42 }
  0x97   :  { %1435 = vmatmul.mubr.msk.bf16.gmra.mrb[24].mxu1 %vm261_vm0, %v1844_v48 }
  0x98   :  { %1473 = vmatmul.mubr.msk.bf16.gmra.mrb[28].mxu0 %vm261_vm0, %v720_v6  ;;  %1438 = vmatprep.mubr.msk.bf16.mxu1 %vm261_vm0, %v1856_v63 }
  0x9f   :  { %1439 = vmatmul.mubr.msk.bf16.gmra.mrb[28].mxu1 %vm261_vm0, %v115_v8 }
 0x11a   :  { %v1378_v23 = vpop.f32.mrb[0].mxu1 }
 0x11b   :  { %v344_v29 = vpop.f32.mrb[1].mxu1 }
 0x11c   :  { %v1379_v44 = vpop.f32.mrb[2].mxu1 }
 0x11d   :  { %v347_v45 = vpop.f32.mrb[3].mxu1 }
 0x122   :  { %v1382_v46 = vpop.f32.mrb[4].mxu1 }
 0x123   :  { %v360_v43 = vpop.f32.mrb[5].mxu1 }
 0x124   :  { %v1383_v47 = vpop.f32.mrb[6].mxu1 }
 0x125   :  { %v363_v50 = vpop.f32.mrb[7].mxu1 }
 0x12a   :  { %v1386_v51 = vpop.f32.mrb[8].mxu1 }
 0x12b   :  { %v376_v52 = vpop.f32.mrb[9].mxu1 }
 0x12c   :  { %v1387_v54 = vpop.f32.mrb[10].mxu1 }
 0x12d   :  { %v379_v55 = vpop.f32.mrb[11].mxu1 }
 0x132   :  { %v1921_v48 = vpop.f32.mrb[12].mxu1 }
 0x133   :  { %v1923_v56 = vpop.f32.mrb[13].mxu1  ;;  %v1446_v57 = vpop.f32.mrb[0].mxu0 }
 0x134   :  { %v1925_v58 = vpop.f32.mrb[14].mxu1  ;;  %v1478_v28 = vadd.f32 %v1446_v57, %v1378_v23  ;;  %v809_v59 = vpop.f32.mrb[1].mxu0 }
 0x135   :  { %v1927_v60 = vpop.f32.mrb[15].mxu1  ;;  %v1479_v61 = vadd.f32 %v809_v59, %v344_v29  ;;  %v1447_v31 = vpop.f32.mrb[2].mxu0 }
 0x136   :  { %v1480_v62 = vadd.f32 %v1447_v31, %v1379_v44  ;;  %v812_v63 = vpop.f32.mrb[3].mxu0 }
 0x137   :  { %v1481_v0 = vadd.f32 %v812_v63, %v347_v45 }
 0x138   :  { %v977_v3 = vsel %vm968_vm3, %v1480_v62, -inf }
 0x139   :  { %v978_v4 = vmax.f32 %v1478_v28, %v977_v3  ;;  %v969_v5 = vsel %vm968_vm3, %v1481_v0, -inf }
 0x13a   :  { %v970_v8 = vmax.f32 %v1479_v61, %v969_v5 }
 0x13b   :  { %v979_v10 = vrot.slane %v978_v4, 4  ;;  %v1450_v11 = vpop.f32.mrb[4].mxu0 }
 0x13c   :  { %v971_v12 = vrot.slane %v970_v8, 4  ;;  %v1482_v13 = vadd.f32 %v1450_v11, %v1382_v46  ;;  %v825_v14 = vpop.f32.mrb[5].mxu0 }
 0x13d   :  { %v980_v16 = vmax.f32 %v978_v4, %v979_v10  ;;  %v1483_v17 = vadd.f32 %v825_v14, %v360_v43  ;;  %v1451_v18 = vpop.f32.mrb[6].mxu0 }
 0x13e   :  { %v972_v49 = vmax.f32 %v970_v8, %v971_v12  ;;  %v1484_v19 = vadd.f32 %v1451_v18, %v1383_v47  ;;  %v828_v53 = vpop.f32.mrb[7].mxu0 }
 0x13f   :  { %v981_v20 = vrot.slane %v980_v16, 2  ;;  %v1485_v7 = vadd.f32 %v828_v53, %v363_v50 }
 0x140   :  { %v973_v22 = vrot.slane %v972_v49, 2  ;;  %v993_v9 = vsel %vm968_vm3, %v1484_v19, -inf }
 0x141   :  { %v982_v24 = vmax.f32 %v980_v16, %v981_v20  ;;  %v994_v25 = vmax.f32 %v1482_v13, %v993_v9  ;;  %v985_v26 = vsel %vm968_vm3, %v1485_v7, -inf }
 0x142   :  { %v974_v27 = vmax.f32 %v972_v49, %v973_v22  ;;  %v986_v30 = vmax.f32 %v1483_v17, %v985_v26 }
 0x143   :  { %v983_v32 = vrot.slane %v982_v24, 1  ;;  %v995_v33 = vrot.slane %v994_v25, 4  ;;  %v1454_v34 = vpop.f32.mrb[8].mxu0 }
 0x144   :  { %v975_v36 = vrot.slane %v974_v27, 1  ;;  %v987_v37 = vrot.slane %v986_v30, 4  ;;  %v1486_v38 = vadd.f32 %v1454_v34, %v1386_v51  ;;  %v841_v1 = vpop.f32.mrb[9].mxu0 }
 0x145   :  { %v984_v15 = vmax.f32 %v982_v24, %v983_v32  ;;  %v996_v39 = vmax.f32 %v994_v25, %v995_v33  ;;  %v1487_v40 = vadd.f32 %v841_v1, %v376_v52  ;;  %v1455_v2 = vpop.f32.mrb[10].mxu0 }
 0x146   :  { %v976_v21 = vmax.f32 %v974_v27, %v975_v36  ;;  %v988_v42 = vmax.f32 %v986_v30, %v987_v37  ;;  %v1488_v6 = vadd.f32 %v1455_v2, %v1387_v54  ;;  %v844_v23 = vpop.f32.mrb[11].mxu0 }
 0x147   :  { %v1105_v29 = vadd.f32 %v1936_v35, %v984_v15  ;;  %v997_v44 = vrot.slane %v996_v39, 2  ;;  %v1489_v45 = vadd.f32 %v844_v23, %v379_v55 }
 0x148   :  { %v1104_v46 = vadd.f32 %v1936_v35, %v976_v21  ;;  %v989_v43 = vrot.slane %v988_v42, 2  ;;  %v1009_v47 = vsel %vm968_vm3, %v1488_v6, -inf }
 0x149   :  { %v1128_v50 = vmul.f32 %v1941_v41, %v1105_v29  ;;  %v998_v51 = vmax.f32 %v996_v39, %v997_v44  ;;  %v1010_v52 = vmax.f32 %v1486_v38, %v1009_v47  ;;  %v1001_v57 = vsel %vm968_vm3, %v1489_v45, -inf }
 0x14a   :  { %v1127_v28 = vmul.f32 %v1941_v41, %v1104_v46  ;;  %v990_v59 = vmax.f32 %v988_v42, %v989_v43  ;;  %v1002_v54 = vmax.f32 %v1487_v40, %v1001_v57 }
 0x14b   :  { %v1159_v61 = vrot.slane %v1128_v50, 7  ;;  %v999_v31 = vrot.slane %v998_v51, 1  ;;  %v1011_v62 = vrot.slane %v1010_v52, 4  ;;  %v1458_v55 = vpop.f32.mrb[12].mxu0 }
 0x14c   :  { %v991_v63 = vrot.slane %v990_v59, 1  ;;  %v1003_v0 = vrot.slane %v1002_v54, 4  ;;  %v1490_v3 = vadd.f32 %v1458_v55, %v1921_v48  ;;  %v857_v4 = vpop.f32.mrb[13].mxu0 }
 0x14d   :  { %v1000_v5 = vmax.f32 %v998_v51, %v999_v31  ;;  %v1012_v8 = vmax.f32 %v1010_v52, %v1011_v62  ;;  %v1491_v10 = vadd.f32 %v857_v4, %v1923_v56  ;;  %v1459_v11 = vpop.f32.mrb[14].mxu0  ;;  %v1161_v12 = vsel %vm1160_vm4, %v1159_v61, %v1127_v28 }
 0x14e   :  { %v992_v13 = vmax.f32 %v990_v59, %v991_v63  ;;  %v1004_v14 = vmax.f32 %v1002_v54, %v1003_v0  ;;  %v1492_v16 = vadd.f32 %v1459_v11, %v1925_v58  ;;  %v860_v17 = vpop.f32.mrb[15].mxu0 }
 0x14f   :  { %v1107_v18 = vadd.f32 %v1936_v35, %v1000_v5  ;;  %v1013_v49 = vrot.slane %v1012_v8, 2  ;;  %v1493_v19 = vadd.f32 %v860_v17, %v1927_v60 }
 0x150   :  { %v1106_v48 = vadd.f32 %v1936_v35, %v992_v13  ;;  %v1005_v53 = vrot.slane %v1004_v14, 2  ;;  %v1025_v20 = vsel %vm968_vm3, %v1492_v16, -inf }
 0x151   :  { %v1130_v56 = vmul.f32 %v1941_v41, %v1107_v18  ;;  %v1014_v7 = vmax.f32 %v1012_v8, %v1013_v49  ;;  %v1026_v22 = vmax.f32 %v1490_v3, %v1025_v20  ;;  %v1017_v9 = vsel %vm968_vm3, %v1493_v19, -inf }
 0x152   :  { %v1129_v24 = vmul.f32 %v1941_v41, %v1106_v48  ;;  %v1006_v58 = vmax.f32 %v1004_v14, %v1005_v53  ;;  %v1018_v25 = vmax.f32 %v1491_v10, %v1017_v9 }
 0x153   :  { %v1015_v26 = vrot.slane %v1014_v7, 1  ;;  %v1027_v27 = vrot.slane %v1026_v22, 4  ;;  %v1462_v30 = vpop.f32.mrb[16].mxu0  ;;  %v1165_v1 = vrot.slane %v1130_v56, 5 }
 0x154   :  { %v1162_v60 = vrot.slane %v1129_v24, 6  ;;  %v1007_v32 = vrot.slane %v1006_v58, 1  ;;  %v1019_v33 = vrot.slane %v1018_v25, 4  ;;  %v873_v34 = vpop.f32.mrb[17].mxu0 }
 0x155   :  { %v1016_v36 = vmax.f32 %v1014_v7, %v1015_v26  ;;  %v1028_v37 = vmax.f32 %v1026_v22, %v1027_v27  ;;  %v1463_v38 = vpop.f32.mrb[18].mxu0 }
 0x156   :  { %v1008_v15 = vmax.f32 %v1006_v58, %v1007_v32  ;;  %v1020_v39 = vmax.f32 %v1018_v25, %v1019_v33  ;;  %v876_v40 = vpop.f32.mrb[19].mxu0  ;;  %v1164_v2 = vsel %vm1163_vm5, %v1162_v60, %v1161_v12 }
 0x157   :  { %v1029_v21 = vrot.slane %v1028_v37, 2  ;;  %v1109_v42 = vadd.f32 %v1936_v35, %v1016_v36  ;;  %v1167_v6 = vsel %vm1166_vm6, %v1165_v1, %v1164_v2 }
 0x158   :  { %v1108_v23 = vadd.f32 %v1936_v35, %v1008_v15  ;;  %v1021_v29 = vrot.slane %v1020_v39, 2 }
 0x159   :  { %v1030_v44 = vmax.f32 %v1028_v37, %v1029_v21  ;;  %v1132_v45 = vmul.f32 %v1941_v41, %v1109_v42 }
 0x15a   :  { %v1022_v46 = vmax.f32 %v1020_v39, %v1021_v29  ;;  %v1428_v43 = vpop.f32.mrb[16].mxu1  ;;  %v1131_v47 = vmul.f32 %v1941_v41, %v1108_v23 }
 0x15b   :  { %v1031_v50 = vrot.slane %v1030_v44, 1  ;;  %v1494_v51 = vadd.f32 %v1462_v30, %v1428_v43  ;;  %v607_v52 = vpop.f32.mrb[17].mxu1  ;;  %v1466_v57 = vpop.f32.mrb[20].mxu0  ;;  %v1171_v3 = vrot.slane %v1132_v45, 3 }
 0x15c   :  { %v1023_v28 = vrot.slane %v1022_v46, 1  ;;  %v1495_v59 = vadd.f32 %v873_v34, %v607_v52  ;;  %v1429_v54 = vpop.f32.mrb[18].mxu1  ;;  %v889_v61 = vpop.f32.mrb[21].mxu0  ;;  %v1168_v31 = vrot.slane %v1131_v47, 4 }
 0x15d   :  { %v1496_v62 = vadd.f32 %v1463_v38, %v1429_v54  ;;  %v610_v55 = vpop.f32.mrb[19].mxu1  ;;  %v1467_v63 = vpop.f32.mrb[22].mxu0  ;;  %v1032_v0 = vmax.f32 %v1030_v44, %v1031_v50 }
 0x15e   :  { %v1024_v4 = vmax.f32 %v1022_v46, %v1023_v28  ;;  %v1497_v5 = vadd.f32 %v876_v40, %v610_v55  ;;  %v892_v8 = vpop.f32.mrb[23].mxu0  ;;  %v1170_v10 = vsel %vm1169_vm7, %v1168_v31, %v1167_v6 }
 0x15f   :  { %v1041_v11 = vsel %vm968_vm3, %v1496_v62, -inf  ;;  %v1111_v12 = vadd.f32 %v1936_v35, %v1032_v0  ;;  %v1173_v13 = vsel %vm1172_vm8, %v1171_v3, %v1170_v10 }
 0x160   :  { %v1042_v14 = vmax.f32 %v1494_v51, %v1041_v11  ;;  %v1033_v16 = vsel %vm968_vm3, %v1497_v5, -inf  ;;  %v1110_v17 = vadd.f32 %v1936_v35, %v1024_v4 }
 0x161   :  { %v1034_v18 = vmax.f32 %v1495_v59, %v1033_v16  ;;  %v1134_v49 = vmul.f32 %v1941_v41, %v1111_v12 }
 0x162   :  { %v1043_v19 = vrot.slane %v1042_v14, 4  ;;  %v1432_v48 = vpop.f32.mrb[20].mxu1  ;;  %v1133_v53 = vmul.f32 %v1941_v41, %v1110_v17 }
 0x163   :  { %v1035_v20 = vrot.slane %v1034_v18, 4  ;;  %v1498_v56 = vadd.f32 %v1466_v57, %v1432_v48  ;;  %v623_v7 = vpop.f32.mrb[21].mxu1  ;;  %v1470_v22 = vpop.f32.mrb[24].mxu0  ;;  %v1177_v33 = vrot.slane %v1134_v49, 1 }
 0x164   :  { %v1044_v9 = vmax.f32 %v1042_v14, %v1043_v19  ;;  %v1499_v24 = vadd.f32 %v889_v61, %v623_v7  ;;  %v1433_v58 = vpop.f32.mrb[22].mxu1  ;;  %v905_v25 = vpop.f32.mrb[25].mxu0  ;;  %v1174_v26 = vrot.slane %v1133_v53, 2 }
 0x165   :  { %v1036_v27 = vmax.f32 %v1034_v18, %v1035_v20  ;;  %v1500_v30 = vadd.f32 %v1467_v63, %v1433_v58  ;;  %v626_v60 = vpop.f32.mrb[23].mxu1  ;;  %v1471_v32 = vpop.f32.mrb[26].mxu0 }
 0x166   :  { %v1045_v34 = vrot.slane %v1044_v9, 2  ;;  %v1501_v36 = vadd.f32 %v892_v8, %v626_v60  ;;  %v908_v37 = vpop.f32.mrb[27].mxu0  ;;  %v1176_v38 = vsel %vm1175_vm9, %v1174_v26, %v1173_v13 }
 0x167   :  { %v1037_v1 = vrot.slane %v1036_v27, 2  ;;  %v1057_v15 = vsel %vm968_vm3, %v1500_v30, -inf  ;;  %v1179_v39 = vsel %vm1178_vm10, %v1177_v33, %v1176_v38 }
 0x168   :  { %v1046_v40 = vmax.f32 %v1044_v9, %v1045_v34  ;;  %v1058_v2 = vmax.f32 %v1498_v56, %v1057_v15  ;;  %v1049_v21 = vsel %vm968_vm3, %v1501_v36, -inf  ;;  %1196 = vadd.xlane.f32.xlu0 %v1179_v39 }
 0x169   :  { %v1038_v42 = vmax.f32 %v1036_v27, %v1037_v1  ;;  %v1050_v6 = vmax.f32 %v1499_v24, %v1049_v21 }
 0x16a   :  { %v1047_v23 = vrot.slane %v1046_v40, 1  ;;  %v1059_v29 = vrot.slane %v1058_v2, 4  ;;  %v1436_v44 = vpop.f32.mrb[24].mxu1 }
 0x16b   :  { %v1039_v45 = vrot.slane %v1038_v42, 1  ;;  %v1051_v46 = vrot.slane %v1050_v6, 4  ;;  %v1502_v43 = vadd.f32 %v1470_v22, %v1436_v44  ;;  %v639_v47 = vpop.f32.mrb[25].mxu1  ;;  %v1474_v50 = vpop.f32.mrb[28].mxu0 }
 0x16c   :  { %v1048_v51 = vmax.f32 %v1046_v40, %v1047_v23  ;;  %v1060_v52 = vmax.f32 %v1058_v2, %v1059_v29  ;;  %v1503_v57 = vadd.f32 %v905_v25, %v639_v47  ;;  %v1437_v28 = vpop.f32.mrb[26].mxu1  ;;  %v921_v59 = vpop.f32.mrb[29].mxu0 }
 0x16d   :  { %v1040_v54 = vmax.f32 %v1038_v42, %v1039_v45  ;;  %v1052_v61 = vmax.f32 %v1050_v6, %v1051_v46  ;;  %v1504_v31 = vadd.f32 %v1471_v32, %v1437_v28  ;;  %v642_v62 = vpop.f32.mrb[27].mxu1  ;;  %v1475_v55 = vpop.f32.mrb[30].mxu0 }
 0x16e   :  { %v1113_v63 = vadd.f32 %v1936_v35, %v1048_v51  ;;  %v1061_v0 = vrot.slane %v1060_v52, 2  ;;  %v1505_v3 = vadd.f32 %v908_v37, %v642_v62  ;;  %v924_v4 = vpop.f32.mrb[31].mxu0 }
 0x16f   :  { %v1112_v5 = vadd.f32 %v1936_v35, %v1040_v54  ;;  %v1053_v8 = vrot.slane %v1052_v61, 2  ;;  %v1073_v10 = vsel %vm968_vm3, %v1504_v31, -inf }
 0x170   :  { %v1136_v11 = vmul.f32 %v1941_v41, %v1113_v63  ;;  %v1062_v12 = vmax.f32 %v1060_v52, %v1061_v0  ;;  %v1074_v13 = vmax.f32 %v1502_v43, %v1073_v10  ;;  %v1065_v14 = vsel %vm968_vm3, %v1505_v3, -inf }
 0x171   :  { %v1135_v16 = vmul.f32 %v1941_v41, %v1112_v5  ;;  %v1054_v17 = vmax.f32 %v1052_v61, %v1053_v8  ;;  %v1066_v18 = vmax.f32 %v1503_v57, %v1065_v14 }
 0x172   :  { %v1180_v49 = vrot.slane %v1136_v11, 7  ;;  %v1063_v19 = vrot.slane %v1062_v12, 1  ;;  %v1075_v48 = vrot.slane %v1074_v13, 4  ;;  %v1440_v53 = vpop.f32.mrb[28].mxu1 }
 0x173   :  { %v1055_v20 = vrot.slane %v1054_v17, 1  ;;  %v1067_v56 = vrot.slane %v1066_v18, 4  ;;  %v1506_v7 = vadd.f32 %v1474_v50, %v1440_v53  ;;  %v655_v22 = vpop.f32.mrb[29].mxu1 }
 0x174   :  { %v1064_v9 = vmax.f32 %v1062_v12, %v1063_v19  ;;  %v1076_v24 = vmax.f32 %v1074_v13, %v1075_v48  ;;  %v1507_v58 = vadd.f32 %v921_v59, %v655_v22  ;;  %v1441_v25 = vpop.f32.mrb[30].mxu1  ;;  %v1181_v26 = vsel %vm1160_vm4, %v1180_v49, %v1135_v16 }
 0x175   :  { %v1056_v27 = vmax.f32 %v1054_v17, %v1055_v20  ;;  %v1068_v30 = vmax.f32 %v1066_v18, %v1067_v56  ;;  %v1508_v60 = vadd.f32 %v1475_v55, %v1441_v25  ;;  %v658_v32 = vpop.f32.mrb[31].mxu1  ;;  %v1320_v20 = vld [vmem:[#allocation2] ss:$0 sm:$0xff] }
 0x176   :  { %v1115_v33 = vadd.f32 %v1936_v35, %v1064_v9  ;;  %v1077_v34 = vrot.slane %v1076_v24, 2  ;;  %v1509_v36 = vadd.f32 %v924_v4, %v658_v32 }
 0x177   :  { %v1114_v37 = vadd.f32 %v1936_v35, %v1056_v27  ;;  %v1069_v38 = vrot.slane %v1068_v30, 2  ;;  %v1089_v1 = vsel %vm968_vm3, %v1508_v60, -inf  ;;  %v1221_v60 = vlaneseq }
 0x178   :  { %v1138_v15 = vmul.f32 %v1941_v41, %v1115_v33  ;;  %v1078_v39 = vmax.f32 %v1076_v24, %v1077_v34  ;;  %v1090_v40 = vmax.f32 %v1506_v7, %v1089_v1  ;;  %v1081_v2 = vsel %vm968_vm3, %v1509_v36, -inf }
 0x179   :  { %v1137_v21 = vmul.f32 %v1941_v41, %v1114_v37  ;;  %v1070_v42 = vmax.f32 %v1068_v30, %v1069_v38  ;;  %v1082_v6 = vmax.f32 %v1507_v58, %v1081_v2  ;;  %v1222_v32 = vshrl.u32 %v1221_v60, 7 }
 0x17a   :  { %v1079_v23 = vrot.slane %v1078_v39, 1  ;;  %v1091_v29 = vrot.slane %v1090_v40, 4  ;;  %v1184_v50 = vrot.slane %v1138_v15, 5  ;;  %v1225_v33 = vand.u32 127, %v1221_v60 }
 0x17b   :  { %v1182_v44 = vrot.slane %v1137_v21, 6  ;;  %v1071_v45 = vrot.slane %v1070_v42, 1  ;;  %v1083_v46 = vrot.slane %v1082_v6, 4  ;;  %v1223_v34 = vadd.s32 8, %v1222_v32 }
 0x17c   :  { %v1080_v43 = vmax.f32 %v1078_v39, %v1079_v23  ;;  %v1092_v47 = vmax.f32 %v1090_v40, %v1091_v29  ;;  %vm1226_vm11 = vcmp.eq.s32.totalorder %v1222_v32, %v1225_v33 }
 0x17d   :  { %v1072_v51 = vmax.f32 %v1070_v42, %v1071_v45  ;;  %v1084_v52 = vmax.f32 %v1082_v6, %v1083_v46  ;;  %v1183_v57 = vsel %vm1163_vm5, %v1182_v44, %v1181_v26  ;;  %vm1227_vm12 = vcmp.eq.s32.totalorder %v1223_v34, %v1225_v33 }
 0x17e   :  { %v1117_v28 = vadd.f32 %v1936_v35, %v1080_v43  ;;  %v1093_v59 = vrot.slane %v1092_v47, 2  ;;  %v1185_v54 = vsel %vm1166_vm6, %v1184_v50, %v1183_v57 }
 0x17f   :  { %v1116_v61 = vadd.f32 %v1936_v35, %v1072_v51  ;;  %v1085_v31 = vrot.slane %v1084_v52, 2 }
 0x180   :  { %v1094_v62 = vmax.f32 %v1092_v47, %v1093_v59  ;;  %v1140_v55 = vmul.f32 %v1941_v41, %v1117_v28 }
 0x181   :  { %v1086_v63 = vmax.f32 %v1084_v52, %v1085_v31  ;;  %v1139_v0 = vmul.f32 %v1941_v41, %v1116_v61 }
 0x182   :  { %v1095_v3 = vrot.slane %v1094_v62, 1  ;;  %v1188_v10 = vrot.slane %v1140_v55, 3 }
 0x183   :  { %v1087_v4 = vrot.slane %v1086_v63, 1  ;;  %v1186_v5 = vrot.slane %v1139_v0, 4 }
 0x184   :  { %v1096_v8 = vmax.f32 %v1094_v62, %v1095_v3 }
 0x185   :  { %v1088_v11 = vmax.f32 %v1086_v63, %v1087_v4  ;;  %v1187_v12 = vsel %vm1169_vm7, %v1186_v5, %v1185_v54 }
 0x186   :  { %v1119_v13 = vadd.f32 %v1936_v35, %v1096_v8  ;;  %v1189_v14 = vsel %vm1172_vm8, %v1188_v10, %v1187_v12 }
 0x187   :  { %v1118_v16 = vadd.f32 %v1936_v35, %v1088_v11 }
 0x188   :  { %v1142_v17 = vmul.f32 %v1941_v41, %v1119_v13 }
 0x189   :  { %v1141_v18 = vmul.f32 %v1941_v41, %v1118_v16 }
 0x18a   :  { %v1192_v19 = vrot.slane %v1142_v17, 1 }
 0x18b   :  { %v1190_v49 = vrot.slane %v1141_v18, 2 }
 0x18d   :  { %v1191_v48 = vsel %vm1175_vm9, %v1190_v49, %v1189_v14 }
 0x18e   :  { %v1193_v53 = vsel %vm1178_vm10, %v1192_v19, %v1191_v48 }
 0x18f   :  { %1198 = vadd.xlane.f32.xlu0 %v1193_v53 }
 0x1f5   :  { %v1197_v56 = vpop.xlane.xlu0 %1196 }
 0x1f6   :  { %v1207_v7 = vadd.f32 %v1320_v20, %v1197_v56 }
 0x1f8   :  { %v1321_v22 = vmul.f32 -1.442695, %v1207_v7 }
 0x1fa   :  { %1556 = vpow2.f32 %v1321_v22 }
 0x204   :  { %v1557_v9 = vpop.eup %1556 }
 0x205   :  { %v1215_v24 = vadd.f32 1.0, %v1557_v9 }
 0x207   :  { %1558 = vrcp.f32 %v1215_v24 }
 0x211   :  { %v1559_v35 = vpop.eup %1558 }
 0x212   :  { %1230 = vperm.xlu1 %1551, %v1559_v35  }
 0x21c   :  { %v1199_v58 = vpop.xlane.xlu0 %1198 }
 0x21d   :  { %v1208_v25 = vadd.f32 %v1320_v20, %v1199_v58 }
 0x21f   :  { %v1322_v41 = vmul.f32 -1.442695, %v1208_v25 }
 0x221   :  { %1560 = vpow2.f32 %v1322_v41 }
 0x22b   :  { %v1561_v26 = vpop.eup %1560 }
 0x22c   :  { %v1216_v27 = vadd.f32 1.0, %v1561_v26 }
 0x22e   :  { %1562 = vrcp.f32 %v1216_v27 }
 0x238   :  { %v1563_v30 = vpop.eup %1562 }
 0x239   :  { %1235 = vperm.xlu1 %1551, %v1563_v30  }
 0x291   :  { %v1231_v36 = vpop.permute.xlu1 %1230 }
 0x292   :  { %v1238_v37 = vsel %vm1226_vm11, %v1231_v36, 0.0 }
 0x293   :  { %v1240_v15 = vsel %vm261_vm0, %v1238_v37, 0.0 }
 0x2b8   :  { %v1236_v38 = vpop.permute.xlu1 %1235 }
 0x2b9   :  { %v1239_v1 = vsel %vm1227_vm12, %v1236_v38, 0.0 }
 0x2ba   :  { %v1241_v39 = vsel %vm261_vm0, %v1239_v1, 0.0 }
 0x2bb   :  { %v1242_v40 = vadd.f32 %v1241_v39, %v1240_v15 }
 0x2bd   :  { %v1243_v2 = vrot.slane %v1242_v40, 4 }
 0x2bf   :  { %v1244_v21 = vadd.f32 %v1243_v2, %v1242_v40 }
 0x2c1   :  { %v1245_v42 = vrot.slane %v1244_v21, 2 }
 0x2c3   :  { %v1246_v6 = vadd.f32 %v1245_v42, %v1244_v21 }
 0x2c5   :  { %v1247_v23 = vrot.slane %v1246_v6, 1 }
 0x2c7   :  { %v1248_v29 = vadd.f32 %v1247_v23, %v1246_v6 }
 0x2c9   :  { %1250 = vst.msk [vmem:[#allocation9] sm:$0x1] %vm1249_vm13, %v1248_v29 }
 0x2ca   :  { %1641 = shalt.err (!%p1638_p0)
}
 0x2cb   :  { %s1642_s18 = scalar_lea.hbm %s2025_s6, 16 }
 0x2cc   :  { %p1643_p1 = scmp.ne.s32.totalorder %s2025_s6, %s1642_s18  ;;  %p1646_p2 = scmp.lt.u32.totalorder %s1642_s18, %s2025_s6 }
 0x2ce   :  { %p1648_p3 = pnand %p1646_p2, %p1643_p1 }
 0x2d0   :  { %1651 = shalt.err (!%p1648_p3)
}
 0x2d1   :  { %1260 = dma.vmem_to_hbm [thread:$0]  %s1258_s4, 16, %s2025_s6, [#allocation5]  }
 0x2d2   :  { %1656 = dma.done.wait [#allocation5], 16  }
 0x2d3   :  { %1657 = vsyncadd [#allocation5], 4294967280 }
 0x2d4   :  { %1264 = vsyncpa [#allocation4], 1 }
 0x2d5   :  { %1265 = vsyncpa [#allocation7], 1 }
 0x2d6   :  { %1266 = vsyncpa [#allocation5], 1 }

</bundles_post_ra>
